<compile_context>
chip_gen: v7x
topology: tpu7x:2x2x1
jax: 0.10.0
libtpu: 0.0.40
codegen_flags: <defaults>
</compile_context>

<pallas_src>
import functools

import jax
import jax.numpy as jnp
from jax.experimental import pallas as pl
from jax.experimental.pallas import tpu as pltpu


def _round_up(x: int, m: int) -> int:
    return ((x + m - 1) // m) * m


def _vmem_budget_bytes() -> int:
    """Generation-aware VMEM budget (~70% of per-TC physical VMEM).

    v5e/v6e: 128 MiB physical -> ~90 MiB budget;  v7x: 64 MiB -> ~45 MiB budget.
    Falls back to the v7x-safe number if the hardware query is unavailable.
    """
    phys = 64 * 1024 * 1024
    try:
        phys = int(pltpu.get_tpu_info().vmem_capacity_bytes)
    except Exception:
        pass
    return max(int(phys * 0.70), 32 * 1024 * 1024)


def _graph_contrastive_kernel(labels_ref, feat_ref, inv_counts_ref, w_hbm_ref,
                              out_ref, sums_ref, *,
                              normalize_features: bool,
                              lambda_reg: float,
                              inv_temperature: float,
                              n_unique: int):
    i = pl.program_id(0)
    n_steps = pl.num_programs(0)

    @pl.when(i == 0)
    def _init():
        sums_ref[...] = jnp.zeros_like(sums_ref)

    # --- streamed scatter-add over this tile of samples (HBM-bandwidth bound) ---
    labels = labels_ref[...]                      # (1, TILE) int32, -1 = padding
    feat = feat_ref[...]                          # (TILE, D) in native dtype
    row_ids = jax.lax.broadcasted_iota(jnp.int32, (n_unique, 1), 0)
    onehot = (row_ids == labels).astype(feat.dtype)   # (U, TILE), in-register
    sums_ref[...] += jnp.dot(onehot, feat, preferred_element_type=jnp.float32)

    # --- finalize: similarity, masked log_softmax, weighted loss ---
    @pl.when(i == n_steps - 1)
    def _finalize():
        U = n_unique

        def _epilogue(w_vmem):
            # W lived in HBM (memory_space=pl.ANY) during streaming; copy it
            # into a scoped VMEM buffer only for this tiny (U, U) epilogue.
            pltpu.sync_copy(w_hbm_ref, w_vmem)

            avg = sums_ref[...] * inv_counts_ref[...]           # (U, D)
            if normalize_features:
                # F.normalize(p=2, dim=1): x / max(||x||_2, 1e-12)
                sumsq = jnp.sum(avg * avg, axis=1, keepdims=True)
                avg = avg * jax.lax.rsqrt(jnp.maximum(sumsq, 1e-24))

            # avg @ avg.T via contraction on the last dims (no explicit transpose)
            sim = jax.lax.dot_general(
                avg, avg, (((1,), (1,)), ((), ())),
                preferred_element_type=jnp.float32) * jnp.float32(inv_temperature)

            W = w_vmem[...]                                     # (U, U), pre-rescaled
            rows = jax.lax.broadcasted_iota(jnp.int32, (U, U), 0)
            cols = jax.lax.broadcasted_iota(jnp.int32, (U, U), 1)
            offdiag = (rows != cols).astype(jnp.float32)
            sim = sim * offdiag
            W = W * offdiag

            m = jnp.max(sim, axis=1, keepdims=True)
            shifted = sim - m
            lse = jnp.log(jnp.sum(jnp.exp(shifted), axis=1, keepdims=True))
            log_softmax = shifted - lse

            # -(W * log_softmax).sum(dim=1).mean()  ==  -sum(all) / U
            loss = -jnp.sum(W * log_softmax) / jnp.float32(U)
            out_ref[0, 0] = jnp.float32(lambda_reg) * loss

        pl.run_scoped(_epilogue, pltpu.VMEM((U, U), jnp.float32))


def graph_contrastive_loss(features, interaction_matrix, inverse_indices, *,
                           normalize_features: bool = True,
                           lambda_reg: float = 1.0,
                           temperature: float = 0.1,
                           tile_n: int = 2048):
    """features: (N, D) f32 or bf16 (streamed in native dtype);
    interaction_matrix: (U, U); inverse_indices: (N,) int labels in [0, U).
    (np.unique / pandas dedup is host-side preprocessing, not kernel work.)"""
    features = jnp.asarray(features)
    if features.dtype not in (jnp.float32, jnp.bfloat16):
        features = features.astype(jnp.float32)
    interaction_matrix = jnp.asarray(interaction_matrix, jnp.float32)
    inverse_indices = jnp.asarray(inverse_indices, jnp.int32)

    N, D = features.shape
    U = interaction_matrix.shape[0]
    feat_bytes = features.dtype.itemsize

    # Hoisted scalar preprocessing: data-dependent `interaction.max() > 1` rescale.
    W = jnp.where(interaction_matrix.max() > 1.0,
                  interaction_matrix / 1000.0, interaction_matrix)

    # Per-label counts are label-only data: compute once, pass the reciprocal.
    counts = jnp.zeros((U,), jnp.float32).at[inverse_indices].add(1.0)
    inv_counts = (1.0 / (counts + 1e-8)).reshape(U, 1)

    # --- tile selection: lane-aligned, VMEM-budgeted, minimal zero padding ---
    budget = _vmem_budget_bytes()
    per_block = 2 * 128 * (D * feat_bytes + 4)       # dbl-buffered feat + label rows
    fixed = 2 * U * D * 4 + 8 * U * U * 4 + 4 * U + (1 << 20)  # sums/avg + epilogue
    max_blocks = max(min(tile_n // 128, (budget - fixed) // per_block), 1)
    nb = _round_up(N, 128) // 128                    # number of 128-row blocks in N
    steps = -(-nb // max_blocks)                     # ceil
    tile_blocks = -(-nb // steps)                    # balanced -> minimal padding
    tile = tile_blocks * 128
    n_pad = tile * steps

    if n_pad != N:
        features = jnp.pad(features, ((0, n_pad - N), (0, 0)))
        inverse_indices = jnp.pad(inverse_indices, (0, n_pad - N),
                                  constant_values=-1)
    labels = inverse_indices.reshape(1, n_pad)

    est = fixed + per_block * tile_blocks
    vmem_limit = int(min(budget, max(2 * est + (8 << 20), 32 << 20)))

    kernel = functools.partial(
        _graph_contrastive_kernel,
        normalize_features=normalize_features,
        lambda_reg=float(lambda_reg),
        inv_temperature=float(1.0 / temperature),
        n_unique=U,
    )

    out = pl.pallas_call(
        kernel,
        out_shape=jax.ShapeDtypeStruct((1, 1), jnp.float32),
        grid_spec=pltpu.PrefetchScalarGridSpec(
            num_scalar_prefetch=0,
            grid=(steps,),
            in_specs=[
                pl.BlockSpec((1, tile), lambda i: (0, i)),    # labels  (1, N) int32
                pl.BlockSpec((tile, D), lambda i: (i, 0)),    # features (N, D), native dtype
                pl.BlockSpec((U, 1), lambda i: (0, 0)),       # 1 / (counts + 1e-8)
                pl.BlockSpec(memory_space=pl.ANY),            # W stays in HBM until finalize
            ],
            out_specs=pl.BlockSpec((1, 1), lambda i: (0, 0),
                                   memory_space=pltpu.MemorySpace.SMEM),
            scratch_shapes=[
                pltpu.VMEM((U, D), jnp.float32),              # running f32 sums
            ],
        ),
        compiler_params=pltpu.CompilerParams(
            dimension_semantics=("arbitrary",),               # N axis is a reduction
            vmem_limit_bytes=vmem_limit,
        ),
    )(labels, features, inv_counts, W)
    return out[0, 0]


def _reference_loss(features, interaction_matrix, inverse_indices, *,
                    normalize_features=True, lambda_reg=1.0, temperature=0.1):
    """Pure-JAX reference mirroring the PyTorch forward, for a sanity check."""
    U = interaction_matrix.shape[0]
    counts = jax.ops.segment_sum(jnp.ones((features.shape[0], 1)),
                                 inverse_indices, num_segments=U)
    sums = jax.ops.segment_sum(features, inverse_indices, num_segments=U)
    avg = sums / (counts + 1e-8)
    if normalize_features:
        avg = avg / jnp.maximum(jnp.linalg.norm(avg, axis=1, keepdims=True), 1e-12)
    sim = (avg @ avg.T) / temperature
    W = jnp.where(interaction_matrix.max() > 1, interaction_matrix / 1000.0,
                  interaction_matrix)
    eye = jnp.eye(U)
    sim = sim * (1 - eye)
    W = W * (1 - eye)
    ls = jax.nn.log_softmax(sim, axis=1)
    return lambda_reg * (-(W * ls).sum(axis=1).mean())


if __name__ == "__main__":
    key = jax.random.PRNGKey(0)
    k1, k2, k3, k4 = jax.random.split(key, 4)

    # --- test 1: tiny f32 shapes (single tile, grid = 1) ---
    N, D, U = 16, 32, 8
    features = jax.random.normal(k1, (N, D), dtype=jnp.float32)
    inverse_indices = jnp.arange(N, dtype=jnp.int32) % U
    interaction = jax.random.uniform(k2, (U, U), dtype=jnp.float32,
                                     minval=0.0, maxval=500.0)   # exercises /1000

    loss = graph_contrastive_loss(features, interaction, inverse_indices,
                                  normalize_features=True,
                                  lambda_reg=1.0, temperature=0.1)
    loss = jax.block_until_ready(loss)
    ref = _reference_loss(features, interaction, inverse_indices,
                          normalize_features=True,
                          lambda_reg=1.0, temperature=0.1)
    assert jnp.allclose(loss, ref, rtol=1e-4, atol=1e-4), (loss, ref)

    # --- test 2: multi-step grid, bf16 feature streaming, ragged N padding ---
    N2, D2, U2 = 1000, 128, 32
    features2 = jax.random.normal(k3, (N2, D2), dtype=jnp.float32).astype(jnp.bfloat16)
    inverse_indices2 = (jnp.arange(N2, dtype=jnp.int32) * 7) % U2
    interaction2 = jax.random.uniform(k4, (U2, U2), dtype=jnp.float32,
                                      minval=0.0, maxval=0.9)    # no-rescale branch

    loss2 = graph_contrastive_loss(features2, interaction2, inverse_indices2,
                                   normalize_features=True,
                                   lambda_reg=0.5, temperature=0.2,
                                   tile_n=256)                   # force multi-step grid
    loss2 = jax.block_until_ready(loss2)
    ref2 = _reference_loss(features2.astype(jnp.float32), interaction2,
                           inverse_indices2, normalize_features=True,
                           lambda_reg=0.5, temperature=0.2)
    assert jnp.allclose(loss2, ref2, rtol=1e-3, atol=1e-3), (loss2, ref2)

    print("KERNEL_OK")
</pallas_src>

<mosaic_0001>
module attributes {stable_mosaic.version = 11 : i64} {
  func.func @_graph_contrastive_kernel(%arg0: i32, %arg1: memref<1x128xi32, #tpu.memory_space<vmem>>, %arg2: memref<128x32xf32, #tpu.memory_space<vmem>>, %arg3: memref<8x1xf32, #tpu.memory_space<vmem>>, %arg4: memref<8x8xf32, #tpu.memory_space<any>>, %arg5: memref<1x1xf32, #tpu.memory_space<smem>>, %arg6: memref<8x32xf32, #tpu.memory_space<vmem>>) attributes {dimension_semantics = [#tpu.dimension_semantics<arbitrary>], iteration_bounds = array<i64: 1>, scalar_prefetch = 0 : i64, scratch_operands = 1 : i64, tpu.core_type = #tpu.core_type<tc>, window_params = [{transform_indices = @transform_0, window_bounds = array<i64: 1, 128>}, {transform_indices = @transform_1, window_bounds = array<i64: 128, 32>}, {pipeline_mode = #tpu.pipeline_mode<synchronous>, transform_indices = @transform_2, window_bounds = array<i64: 8, 1>}, {}, {transform_indices = @transform_4, window_bounds = array<i64: 1, 1>}]} {
    %c0_i32 = arith.constant 0 : i32
    %0 = arith.cmpi eq, %arg0, %c0_i32 : i32
    %1 = arith.extui %0 : i1 to i32
    %c0_i32_0 = arith.constant 0 : i32
    %2 = arith.cmpi ne, %1, %c0_i32_0 : i32
    scf.if %2 {
      %cst_10 = arith.constant 0.000000e+00 : f32
      %18 = vector.broadcast %cst_10 : f32 to vector<8x32xf32>
      %c0_11 = arith.constant 0 : index
      %c0_12 = arith.constant 0 : index
      %19 = vector.load %arg6[%c0_11, %c0_12] : memref<8x32xf32, #tpu.memory_space<vmem>>, vector<8x32xf32>
      tpu.vector_store %arg6[%c0_11, %c0_12], %18 {strides = array<i32>} : memref<8x32xf32, #tpu.memory_space<vmem>>, vector<8x32xf32>,
    } else {
    }
    %c0 = arith.constant 0 : index
    %c0_1 = arith.constant 0 : index
    %3 = vector.load %arg1[%c0, %c0_1] : memref<1x128xi32, #tpu.memory_space<vmem>>, vector<1x128xi32>
    %c0_2 = arith.constant 0 : index
    %c0_3 = arith.constant 0 : index
    %4 = vector.load %arg2[%c0_2, %c0_3] : memref<128x32xf32, #tpu.memory_space<vmem>>, vector<128x32xf32>
    %5 = tpu.iota {dimensions = array<i32: 0>} : vector<8x1xi32>
    %6 = vector.broadcast %5 : vector<8x1xi32> to vector<8x128xi32>
    %7 = vector.broadcast %3 : vector<1x128xi32> to vector<8x128xi32>
    %8 = arith.cmpi eq, %6, %7 : vector<8x128xi32>
    %9 = arith.extui %8 : vector<8x128xi1> to vector<8x128xi32>
    %10 = arith.sitofp %9 : vector<8x128xi32> to vector<8x128xf32>
    %c0_4 = arith.constant 0 : index
    %c0_5 = arith.constant 0 : index
    %11 = vector.load %arg6[%c0_4, %c0_5] : memref<8x32xf32, #tpu.memory_space<vmem>>, vector<8x32xf32>
    %cst = arith.constant dense<0.000000e+00> : vector<8x32xf32>
    %12 = tpu.matmul %10, %4, %cst {dimension_numbers = #tpu.dot_dimension_numbers<[1], [0], [0], [1], [0, 0, 1, 1], [], []>} : vector<8x128xf32>, vector<128x32xf32>, vector<8x32xf32> -> vector<8x32xf32>
    %13 = arith.addf %11, %12 : vector<8x32xf32>
    %c0_6 = arith.constant 0 : index
    %c0_7 = arith.constant 0 : index
    %14 = vector.load %arg6[%c0_6, %c0_7] : memref<8x32xf32, #tpu.memory_space<vmem>>, vector<8x32xf32>
    tpu.vector_store %arg6[%c0_6, %c0_7], %13 {strides = array<i32>} : memref<8x32xf32, #tpu.memory_space<vmem>>, vector<8x32xf32>,
    %c0_i32_8 = arith.constant 0 : i32
    %15 = arith.cmpi eq, %arg0, %c0_i32_8 : i32
    %16 = arith.extui %15 : i1 to i32
    %c0_i32_9 = arith.constant 0 : i32
    %17 = arith.cmpi ne, %16, %c0_i32_9 : i32
    scf.if %17 {
      "tpu.region"() ({
        %alloca = memref.alloca() : memref<8x8xf32, #tpu.memory_space<vmem>>
        "tpu.region"() ({
          %60 = tpu.sem_alloc : memref<!tpu.dma_semaphore, #tpu.memory_space<semaphore_mem>>
          tpu.enqueue_dma source(%arg4 : memref<8x8xf32, #tpu.memory_space<any>>) target(%alloca : memref<8x8xf32, #tpu.memory_space<vmem>>) target_semaphore(%60 : memref<!tpu.dma_semaphore, #tpu.memory_space<semaphore_mem>>)
          tpu.wait_dma2 semaphore(%60 : memref<!tpu.dma_semaphore, #tpu.memory_space<semaphore_mem>>) src(%arg4 : memref<8x8xf32, #tpu.memory_space<any>>) dst(%alloca : memref<8x8xf32, #tpu.memory_space<vmem>>)
          tpu.yield
        }) : () -> ()
        %c0_10 = arith.constant 0 : index
        %c0_11 = arith.constant 0 : index
        %18 = vector.load %arg6[%c0_10, %c0_11] : memref<8x32xf32, #tpu.memory_space<vmem>>, vector<8x32xf32>
        %c0_12 = arith.constant 0 : index
        %c0_13 = arith.constant 0 : index
        %19 = vector.load %arg3[%c0_12, %c0_13] : memref<8x1xf32, #tpu.memory_space<vmem>>, vector<8x1xf32>
        %20 = vector.broadcast %19 : vector<8x1xf32> to vector<8x32xf32>
        %21 = arith.mulf %18, %20 : vector<8x32xf32>
        %22 = arith.mulf %21, %21 : vector<8x32xf32>
        %cst_14 = arith.constant dense<0.000000e+00> : vector<8xf32>
        %23 = vector.multi_reduction <add>, %22, %cst_14 [1] : vector<8x32xf32> to vector<8xf32>
        %24 = vector.shape_cast %23 : vector<8xf32> to vector<8x1xf32>
        %cst_15 = arith.constant 1.000000e-24 : f32
        %25 = vector.broadcast %cst_15 : f32 to vector<8x1xf32>
        %26 = arith.maximumf %24, %25 : vector<8x1xf32>
        %27 = math.rsqrt %26 : vector<8x1xf32>
        %28 = vector.broadcast %27 : vector<8x1xf32> to vector<8x32xf32>
        %29 = arith.mulf %21, %28 : vector<8x32xf32>
        %cst_16 = arith.constant dense<0.000000e+00> : vector<8x8xf32>
        %30 = tpu.matmul %29, %29, %cst_16 {dimension_numbers = #tpu.dot_dimension_numbers<[1], [1], [0], [0], [0, 0, 1, 0], [], []>} : vector<8x32xf32>, vector<8x32xf32>, vector<8x8xf32> -> vector<8x8xf32>
        %cst_17 = arith.constant 1.000000e+01 : f32
        %31 = vector.broadcast %cst_17 : f32 to vector<8x8xf32>
        %32 = arith.mulf %30, %31 : vector<8x8xf32>
        %c0_18 = arith.constant 0 : index
        %c0_19 = arith.constant 0 : index
        %33 = vector.load %alloca[%c0_18, %c0_19] : memref<8x8xf32, #tpu.memory_space<vmem>>, vector<8x8xf32>
        %34 = tpu.iota {dimensions = array<i32: 0>} : vector<8x8xi32>
        %35 = tpu.iota {dimensions = array<i32: 1>} : vector<8x8xi32>
        %36 = arith.cmpi ne, %34, %35 : vector<8x8xi32>
        %37 = arith.extui %36 : vector<8x8xi1> to vector<8x8xi32>
        %38 = arith.sitofp %37 : vector<8x8xi32> to vector<8x8xf32>
        %39 = arith.mulf %32, %38 : vector<8x8xf32>
        %40 = arith.mulf %33, %38 : vector<8x8xf32>
        %cst_20 = arith.constant dense<0xFF800000> : vector<8xf32>
        %41 = vector.multi_reduction <maximumf>, %39, %cst_20 [1] : vector<8x8xf32> to vector<8xf32>
        %42 = vector.shape_cast %41 : vector<8xf32> to vector<8x1xf32>
        %43 = vector.broadcast %42 : vector<8x1xf32> to vector<8x8xf32>
        %44 = arith.subf %39, %43 : vector<8x8xf32>
        %45 = math.exp %44 : vector<8x8xf32>
        %cst_21 = arith.constant dense<0.000000e+00> : vector<8xf32>
        %46 = vector.multi_reduction <add>, %45, %cst_21 [1] : vector<8x8xf32> to vector<8xf32>
        %47 = vector.shape_cast %46 : vector<8xf32> to vector<8x1xf32>
        %48 = math.log %47 : vector<8x1xf32>
        %49 = vector.broadcast %48 : vector<8x1xf32> to vector<8x8xf32>
        %50 = arith.subf %44, %49 : vector<8x8xf32>
        %51 = arith.mulf %40, %50 : vector<8x8xf32>
        %52 = vector.shape_cast %51 : vector<8x8xf32> to vector<1x8x8xf32>
        %cst_22 = arith.constant dense<0.000000e+00> : vector<1xf32>
        %53 = vector.multi_reduction <add>, %52, %cst_22 [1, 2] : vector<1x8x8xf32> to vector<1xf32>
        %54 = vector.shape_cast %53 : vector<1xf32> to vector<1x1x1xf32>
        %55 = vector.extract %54[0, 0, 0] : f32 from vector<1x1x1xf32>
        %cst_23 = arith.constant 0.000000e+00 : f32
        %56 = arith.subf %cst_23, %55 : f32
        %cst_24 = arith.constant 8.000000e+00 : f32
        %57 = arith.divf %56, %cst_24 : f32
        %cst_25 = arith.constant 1.000000e+00 : f32
        %58 = arith.mulf %cst_25, %57 : f32
        %c0_26 = arith.constant 0 : index
        %c0_27 = arith.constant 0 : index
        %59 = memref.load %arg5[%c0_26, %c0_27] : memref<1x1xf32, #tpu.memory_space<smem>>
        memref.store %58, %arg5[%c0_26, %c0_27] : memref<1x1xf32, #tpu.memory_space<smem>>
        tpu.yield
      }) : () -> ()
    } else {
    }
    return
  }
  func.func @transform_0(%arg0: i32) -> (i32, i32) {
    %c0_i32 = arith.constant 0 : i32
    %c0_i32_0 = arith.constant 0 : i32
    return %c0_i32, %arg0 : i32, i32
  }
  func.func @transform_1(%arg0: i32) -> (i32, i32) {
    %c0_i32 = arith.constant 0 : i32
    %c0_i32_0 = arith.constant 0 : i32
    return %arg0, %c0_i32 : i32, i32
  }
  func.func @transform_2(%arg0: i32) -> (i32, i32) {
    %c0_i32 = arith.constant 0 : i32
    %c0_i32_0 = arith.constant 0 : i32
    %c0_i32_1 = arith.constant 0 : i32
    return %c0_i32, %c0_i32_0 : i32, i32
  }
  func.func @transform_4(%arg0: i32) -> (i32, i32) {
    %c0_i32 = arith.constant 0 : i32
    %c0_i32_0 = arith.constant 0 : i32
    %c0_i32_1 = arith.constant 0 : i32
    return %c0_i32, %c0_i32_0 : i32, i32
  }
}

</mosaic_0001>

<bundles_post_ra>
// kernel: tpu_custom_call.1
= control target key start
LH: loop header
LB: loop body
LE: loop exit
PB: predicated region body
PF: predicated region fallthrough
CT: control target
= control target key end

     0   :  { %9 = vsyncpa [#allocation4], 0  ;;  %vm20_vm0 = vcmask 261120   ;;  %v438_v2 = vmov 0.0|0.0   ;;  %v439_v6 = vmov 0.0   ;;  %vm440_vm1 = vmmov 0   ;;  %s548_s0 = inlined_call_operand.vmem [shape: s32[1,128], index: 0, kind: input, shape index: {}]   ;;  %s549_s1 = inlined_call_operand.vmem [shape: f32[128,32], index: 1, kind: input, shape index: {}]   ;;  %s550_s2 = inlined_call_operand.vmem [shape: f32[8,1], index: 2, kind: input, shape index: {}]   ;;  %s551_s3 = inlined_call_operand.vmem [shape: f32[8,8], index: 3, kind: input, shape index: {}]   ;;  %s552_s4 = inlined_call_operand.hbm [shape: f32[1,1], index: 4, kind: output, shape index: {}]  }
   0x1   :  { %v23_v0 = vld [vmem:[%s549_s1] sm:$0xff]  ;;  %v24_v1 = vld [vmem:[%s549_s1 + $0x8] sm:$0xff]  ;;  %383 = vmatprep.subr.bf16.mxu0 %v438_v2  ;;  %v25_v4 = vld [vmem:[%s549_s1 + $0x10] sm:$0xff]  ;;  %21 = vst.msk [vmem:[#allocation2] sm:$0xff] %vm20_vm0, %v439_v6  ;;  %375 = vmatprep.mubr.msk.f32.mxu0 %vm440_vm1, %v439_v6  ;;  %v39_v23 = vlaneseq  ;;  %v441_v29 = vmov 1.0  }
   0x2   :  { %v384_v3 = vpack.c.bf16 %v24_v1, %v23_v0  ;;  %v26_v5 = vld [vmem:[%s549_s1 + $0x18] sm:$0xff]  ;;  %v27_v8 = vld [vmem:[%s549_s1 + $0x20] sm:$0xff]  ;;  %v28_v9 = vld [vmem:[%s549_s1 + $0x28] sm:$0xff] }
   0x3   :  { %v387_v7 = vpack.c.bf16 %v26_v5, %v25_v4  ;;  %v390_v10 = vpack.c.bf16 %v28_v9, %v27_v8  ;;  %v29_v11 = vld [vmem:[%s549_s1 + $0x30] sm:$0xff]  ;;  %v30_v12 = vld [vmem:[%s549_s1 + $0x38] sm:$0xff]  ;;  %v31_v14 = vld [vmem:[%s549_s1 + $0x40] sm:$0xff]  ;;  %v40_v27 = vshrl.u32 %v39_v23, 7 }
   0x4   :  { %385 = vmatpush3.bf16.msra.mxu0 %v384_v3  ;;  %v393_v13 = vpack.c.bf16 %v30_v12, %v29_v11  ;;  %v32_v15 = vld [vmem:[%s549_s1 + $0x48] sm:$0xff]  ;;  %v33_v17 = vld [vmem:[%s549_s1 + $0x50] sm:$0xff]  ;;  %v34_v18 = vld [vmem:[%s549_s1 + $0x58] sm:$0xff] }
   0x5   :  { %386 = vmatprep.subr.bf16.mxu0 %v438_v2  ;;  %v396_v16 = vpack.c.bf16 %v32_v15, %v31_v14  ;;  %v399_v19 = vpack.c.bf16 %v34_v18, %v33_v17  ;;  %v35_v20 = vld [vmem:[%s549_s1 + $0x60] sm:$0xff]  ;;  %v36_v21 = vld [vmem:[%s549_s1 + $0x68] sm:$0xff]  ;;  %v37_v24 = vld [vmem:[%s549_s1 + $0x70] sm:$0xff] }
   0x6   :  { %v402_v22 = vpack.c.bf16 %v36_v21, %v35_v20  ;;  %v38_v25 = vld [vmem:[%s549_s1 + $0x78] sm:$0xff]  ;;  %v318_v28 = vld [vmem:[%s548_s0] ss:$0 sm:$0xff] }
   0x7   :  { %v405_v26 = vpack.c.bf16 %v38_v25, %v37_v24  ;;  %vm45_vm2 = vcmp.eq.s32.totalorder %v40_v27, %v318_v28 }
   0x8   :  { %388 = vmatpush3.bf16.msra.mxu0 %v387_v7  ;;  %v48_v30 = vld [vmem:[#allocation2] sm:$0xff] }
   0x9   :  { %389 = vmatprep.subr.bf16.mxu0 %v438_v2 }
   0xc   :  { %391 = vmatpush3.bf16.msra.mxu0 %v390_v10 }
   0xd   :  { %392 = vmatprep.subr.bf16.mxu0 %v438_v2 }
  0x10   :  { %394 = vmatpush3.bf16.msra.mxu0 %v393_v13 }
  0x11   :  { %395 = vmatprep.subr.bf16.mxu0 %v438_v2 }
  0x14   :  { %397 = vmatpush3.bf16.msra.mxu0 %v396_v16 }
  0x15   :  { %398 = vmatprep.subr.bf16.mxu0 %v438_v2 }
  0x18   :  { %400 = vmatpush3.bf16.msra.mxu0 %v399_v19 }
  0x19   :  { %401 = vmatprep.subr.bf16.mxu0 %v438_v2 }
  0x1c   :  { %403 = vmatpush3.bf16.msra.mxu0 %v402_v22 }
  0x1d   :  { %404 = vmatprep.subr.bf16.mxu0 %v438_v2 }
  0x20   :  { %406 = vmatpush3.bf16.msra.mxu0 %v405_v26 }
  0x23   :  { %376 = vmatmul.mubr.msk.f32.vlgmr.msra.gmra.mrb[0].mxu0 %vm45_vm2, %v441_v29 }
  0xf6   :  { %v115_v31 = vpop.f32.mrb[0].mxu0 }
  0xf7   :  { %v119_v32 = vadd.f32 %v115_v31, %v48_v30  ;;  %v377_v33 = vpop.f32.mrb[1].mxu0 }
  0xf9   :  { %121 = vst.msk [vmem:[#allocation2] sm:$0xff] %vm20_vm0, %v119_v32 }
  0xfa   :  { %v157_v34 = vld [vmem:[%s551_s3] sm:$0xff] }
  0xfb   :  { %166 = vsyncadd [#allocation6], 128 }
  0xfc   :  { %434 = dma.done.wait [#allocation6], 128 }
  0xfd   :  { %435 = vsyncadd [#allocation6], 4294967168  ;;  %v171_v35 = vld [vmem:[%s550_s2] sm:$0xff]  ;;  %v442_v36 = vmov 0   ;;  %v443_v42 = vmov 0.0   ;;  %vm444_vm3 = vmmov 0  }
  0xfe   :  { %417 = vset.pattern.permute.xlu0 %v442_v36  ;;  %378 = vmatprep.subr.mxu1 %v443_v42  ;;  %v261_v47 = vand.u32 127, %v39_v23  ;;  %vm267_vm5 = vcmask 64512   ;;  %s424_s28 = scalar_lea.hbm %s552_s4, 16 }
  0xff   :  { %174 = vperm.xlu0 %417, %v171_v35   ;;  %380 = vmatprep.mubr.msk.f32.mxu1 %vm444_vm3, %v443_v42  ;;  %p425_p0 = scmp.ne.s32.totalorder %s552_s4, %s424_s28  ;;  %p428_p1 = scmp.lt.u32.totalorder %s424_s28, %s552_s4 }
 0x100   :  { %v170_v37 = vld [vmem:[#allocation2] sm:$0xff]  ;;  %vm262_vm4 = vcmp.ne.s32.totalorder %v40_v27, %v261_v47 }
 0x101   :  { %v323_v49 = vsel %vm262_vm4, 1.0, %v443_v42  ;;  %p430_p2 = pnand %p428_p1, %p425_p0 }
 0x102   :  { %v266_v61 = vmul.f32 %v323_v49, %v157_v34 }
 0x17e   :  { %v175_v38 = vpop.permute.xlu0 %174 }
 0x17f   :  { %v177_v39 = vmul.f32 %v175_v38, %v170_v37 }
 0x181   :  { %v178_v40 = vmul.f32 %v177_v39, %v177_v39 }
 0x183   :  { %v179_v41 = vsel %vm20_vm0, %v178_v40, 0.0 }
 0x184   :  { %180 = vadd.xlane.f32.xlu0 %v179_v41 }
 0x211   :  { %v181_v43 = vpop.xlane.xlu0 %180 }
 0x212   :  { %v182_v44 = vmax.f32 %v181_v43, 1e-24 }
 0x214   :  { %418 = vrsqrt.f32 %v182_v44 }
 0x21e   :  { %v419_v45 = vpop.eup %418 }
 0x21f   :  { %v184_v46 = vmul.f32 %v419_v45, %v177_v39 }
 0x221   :  { %379 = vmatpush3.xpose.msk.msra.mxu1 %vm20_vm0, %v184_v46 }
 0x224   :  { %381 = vmatmul.mubr.msk.f32.vlgmr.msra.gmra.mrb[0].mxu1 %vm20_vm0, %v184_v46 }
 0x2f7   :  { %v254_v48 = vpop.f32.mrb[0].mxu1 }
 0x2f8   :  { %v258_v50 = vmul.f32 10.0, %v254_v48  ;;  %v382_v51 = vpop.f32.mrb[1].mxu1 }
 0x2fa   :  { %v265_v52 = vmul.f32 %v323_v49, %v258_v50 }
 0x2fc   :  { %v268_v53 = vsel %vm267_vm5, %v265_v52, -inf }
 0x2fd   :  { %269 = vmax.xlane.f32.xlu1 %v268_v53 }
 0x38a   :  { %v270_v54 = vpop.xlane.xlu1 %269 }
 0x38b   :  { %v271_v55 = vsub.f32 %v265_v52, %v270_v54 }
 0x38d   :  { %v272_v56 = vmul.f32 1.442695, %v271_v55 }
 0x38f   :  { %420 = vpow2.f32 %v272_v56 }
 0x399   :  { %v421_v57 = vpop.eup %420 }
 0x39a   :  { %v274_v58 = vsel %vm267_vm5, %v421_v57, 0.0 }
 0x39b   :  { %275 = vadd.xlane.f32.xlu1 %v274_v58 }
 0x428   :  { %v276_v59 = vpop.xlane.xlu1 %275 }
 0x429   :  { %422 = vlog2.f32 %v276_v59 }
 0x433   :  { %v423_v60 = vpop.eup %422 }
 0x434   :  { %v278_v62 = vmul.f32 0.6931472, %v423_v60 }
 0x436   :  { %v279_v63 = vsub.f32 %v271_v55, %v278_v62 }
 0x438   :  { %v280_v0 = vmul.f32 %v279_v63, %v266_v61 }
 0x43a   :  { %v281_v1 = vsel %vm267_vm5, %v280_v0, 0.0 }
 0x43b   :  { %282 = vadd.xlane.f32.xlu1 %v281_v1 }
 0x4c8   :  { %v283_v2 = vpop.xlane.xlu1 %282 }
 0x4c9   :  { %v284_v3 = vrot.slane %v283_v2, 4 }
 0x4cb   :  { %v285_v4 = vadd.f32 %v284_v3, %v283_v2 }
 0x4cd   :  { %v286_v5 = vrot.slane %v285_v4, 2 }
 0x4cf   :  { %v287_v6 = vadd.f32 %v286_v5, %v285_v4 }
 0x4d1   :  { %v288_v7 = vrot.slane %v287_v6, 1 }
 0x4d3   :  { %v289_v8 = vadd.f32 %v288_v7, %v287_v6 }
 0x4d5   :  { %407 = vpush %v289_v8 }
 0x506   :  { %s408_s0 = spop %407 }
 0x507   :  { %s291_s2 = ssub.f32 0.0, %s408_s0 }
 0x509   :  { %s294_s3 = smul.f32 0.125, %s291_s2 }
 0x50b   :  { %296 = sst [smem:[#allocation3]] %s294_s3 }
 0x50c   :  { %433 = shalt.err (!%p430_p2)
}
 0x50d   :  { %s445_s7 = smov [#allocation3]  }
 0x50e   :  { %304 = dma.smem_to_hbm %s445_s7, 16, %s552_s4, [#allocation4]  }
 0x50f   :  { %436 = dma.done.wait [#allocation4], 16  }
 0x510   :  { %437 = vsyncadd [#allocation4], 4294967280 }
 0x511   :  { %308 = sfence }
 0x512   :  { %309 = vsyncpa [#allocation4], 1 }

</bundles_post_ra>
